<compile_context>
chip_gen: v7x
topology: tpu7x:2x2x1
jax: 0.10.0
libtpu: 0.0.40
codegen_flags: <defaults>
</compile_context>

<pallas_src>
import functools

import jax
import jax.numpy as jnp
from jax.experimental import pallas as pl
from jax.experimental.pallas import tpu as pltpu

LANE = 128  # TPU vreg lane width


# ----------------------------------------------------------------------------
# Fused MLP kernel: all layers applied to one row tile, fully in VMEM.
# refs = (x_ref, w0, b0, w1, b1, ..., w_{L-1}, b_{L-1}, out_ref)
# ----------------------------------------------------------------------------
def _mlp_kernel(*refs, n_layers):
    x_ref, param_refs, out_ref = refs[0], refs[1:-1], refs[-1]
    h = x_ref[...]                                  # bf16 row tile
    for k in range(n_layers):
        w = param_refs[2 * k][...]                  # bf16 [d_k, d_{k+1}pad]
        b = param_refs[2 * k + 1][...]              # f32  [1,   d_{k+1}pad]
        # bf16 x bf16 -> f32 accumulation on the MXU.
        h = jnp.dot(h, w, preferred_element_type=jnp.float32) + b
        if k != n_layers - 1:                       # activation between layers only
            h = jnp.maximum(h, 0.0).astype(jnp.bfloat16)   # ReLU, back to bf16 for MXU
    out_ref[...] = h.astype(out_ref.dtype)


def _choose_row_tile(n, row_tile):
    """Multiple-of-8 row tile; keep >=2 grid steps when rows allow (v7x megacore)."""
    n8 = max(8, ((n + 7) // 8) * 8)
    tm = max(8, (min(row_tile, n8) // 8) * 8)
    if pl.cdiv(n, tm) == 1 and n > 8:
        half = (n + 1) // 2
        tm = max(8, ((half + 7) // 8) * 8)
    return tm


def encoder_forward(x, padded_params, d_out, *, row_tile=512):
    """Encoder forward.

    x:             [N, hidden_channels[0]]  (any float dtype; streamed as bf16)
    padded_params: list of (w_bf16 [d_k_pad, d_{k+1}_pad], b_f32 [1, d_{k+1}_pad])
                   from `pad_params_for_lanes`.
    d_out:         true (unpadded) output width; returns [N, d_out] f32.
    """
    n, d_in = x.shape
    n_layers = len(padded_params)
    d_out_pad = padded_params[-1][0].shape[1]

    tm = _choose_row_tile(n, row_tile)
    grid_len = pl.cdiv(n, tm)                       # ragged last block handled by Pallas

    x_bf16 = x.astype(jnp.bfloat16)

    # x block: minor dim equals the full array dim (no 128-divisibility needed).
    in_specs = [pl.BlockSpec((tm, d_in), lambda i: (i, 0))]
    flat_params = []
    for w, b in padded_params:
        flat_params += [w, b]
        # Full-extent blocks, constant index -> resident in VMEM across the grid.
        in_specs.append(pl.BlockSpec(w.shape, lambda i: (0, 0)))
        in_specs.append(pl.BlockSpec(b.shape, lambda i: (0, 0)))

    out = pl.pallas_call(
        functools.partial(_mlp_kernel, n_layers=n_layers),
        out_shape=jax.ShapeDtypeStruct((n, d_out_pad), jnp.float32),
        grid=(grid_len,),
        in_specs=in_specs,
        out_specs=pl.BlockSpec((tm, d_out_pad), lambda i: (i, 0)),
        compiler_params=pltpu.CompilerParams(
            dimension_semantics=("parallel",),      # shard row tiles across TCs
        ),
    )(x_bf16, *flat_params)
    return out[:, :d_out]                           # drop lane padding


# ----------------------------------------------------------------------------
# Parameter construction (xavier-uniform weights, zero biases), deterministic,
# plus one-time lane padding / bf16 cast for the kernel.
# ----------------------------------------------------------------------------
def xavier_uniform(key, fan_in, fan_out, gain=1.0):
    bound = gain * (6.0 / (fan_in + fan_out)) ** 0.5
    return jax.random.uniform(key, (fan_in, fan_out), jnp.float32, -bound, bound)


def make_encoder_params(key, hidden_channels):
    params = []
    keys = jax.random.split(key, len(hidden_channels) - 1)
    for k in range(1, len(hidden_channels)):
        w = xavier_uniform(keys[k - 1], hidden_channels[k - 1], hidden_channels[k])
        b = jnp.zeros((1, hidden_channels[k]), jnp.float32)
        params.append((w, b))
    return params


def pad_params_for_lanes(params, lane=LANE):
    """Zero-pad every hidden/output feature dim up to a multiple of 128 lanes and
    cast weights to bf16 (biases stay f32).  Layer-0 input dim is left unpadded
    so x never needs to be re-materialized.  Zero padding is numerically exact:
    padded columns/rows contribute nothing to the real outputs."""
    padded = []
    prev = params[0][0].shape[0]                    # layer-0 input dim, unpadded
    for w, b in params:
        d_in_k, d_out_k = w.shape
        d_out_pad = ((d_out_k + lane - 1) // lane) * lane
        w_p = jnp.zeros((prev, d_out_pad), jnp.float32).at[:d_in_k, :d_out_k].set(w)
        b_p = jnp.zeros((1, d_out_pad), jnp.float32).at[:, :d_out_k].set(b.reshape(1, -1))
        padded.append((w_p.astype(jnp.bfloat16), b_p))
        prev = d_out_pad
    return padded


# ----------------------------------------------------------------------------
# Pure-JAX references for the correctness check.
# ----------------------------------------------------------------------------
def reference_forward_f32(x, params):
    h = x
    for k, (w, b) in enumerate(params):
        h = jnp.dot(h, w, precision=jax.lax.Precision.HIGHEST) + b
        if k != len(params) - 1:
            h = jnp.maximum(h, 0.0)
    return h


def reference_forward_bf16(x, params):
    """Mirrors the kernel's dtype strategy: bf16 inputs/weights, f32 accumulate."""
    h = x.astype(jnp.bfloat16)
    for k, (w, b) in enumerate(params):
        h = jnp.dot(h, w.astype(jnp.bfloat16), preferred_element_type=jnp.float32) + b
        if k != len(params) - 1:
            h = jnp.maximum(h, 0.0).astype(jnp.bfloat16)
    return h


if __name__ == "__main__":
    key = jax.random.PRNGKey(0)
    # Encoder(hidden_channels=[in, latent, latent, out], activation=ReLU)
    HIDDEN_CHANNELS = [16, 64, 64, 32]
    N = 96  # rows (e.g. graph nodes)

    kx, kp = jax.random.split(key)
    x = jax.random.normal(kx, (N, HIDDEN_CHANNELS[0]), jnp.float32)
    params = make_encoder_params(kp, HIDDEN_CHANNELS)
    padded_params = pad_params_for_lanes(params)    # one-time prep (outside the hot path)

    out = encoder_forward(x, padded_params, d_out=HIDDEN_CHANNELS[-1])
    out = jax.block_until_ready(out)

    ref_bf16 = reference_forward_bf16(x, params)    # same dtype path as the kernel
    ref_f32 = reference_forward_f32(x, params)      # original f32 semantics

    assert out.shape == (N, HIDDEN_CHANNELS[-1])
    assert jnp.allclose(out, ref_bf16, atol=1e-2, rtol=1e-2), "mismatch vs bf16 reference"
    assert jnp.allclose(out, ref_f32, atol=5e-2, rtol=5e-2), "mismatch vs f32 reference"
    print("KERNEL_OK")
</pallas_src>

<mosaic_0001>
module attributes {stable_mosaic.version = 11 : i64} {
  func.func @_mlp_kernel(%arg0: i32, %arg1: memref<48x16xbf16, #tpu.memory_space<vmem>>, %arg2: memref<16x128xbf16, #tpu.memory_space<vmem>>, %arg3: memref<1x128xf32, #tpu.memory_space<vmem>>, %arg4: memref<128x128xbf16, #tpu.memory_space<vmem>>, %arg5: memref<1x128xf32, #tpu.memory_space<vmem>>, %arg6: memref<128x128xbf16, #tpu.memory_space<vmem>>, %arg7: memref<1x128xf32, #tpu.memory_space<vmem>>, %arg8: memref<48x128xf32, #tpu.memory_space<vmem>>) attributes {dimension_semantics = [#tpu.dimension_semantics<parallel>], iteration_bounds = array<i64: 2>, scalar_prefetch = 0 : i64, scratch_operands = 0 : i64, tpu.core_type = #tpu.core_type<tc>, window_params = [{transform_indices = @transform_0, window_bounds = array<i64: 48, 16>}, {pipeline_mode = #tpu.pipeline_mode<synchronous>, transform_indices = @transform_1, window_bounds = array<i64: 16, 128>}, {pipeline_mode = #tpu.pipeline_mode<synchronous>, transform_indices = @transform_2, window_bounds = array<i64: 1, 128>}, {pipeline_mode = #tpu.pipeline_mode<synchronous>, transform_indices = @transform_3, window_bounds = array<i64: 128, 128>}, {pipeline_mode = #tpu.pipeline_mode<synchronous>, transform_indices = @transform_4, window_bounds = array<i64: 1, 128>}, {pipeline_mode = #tpu.pipeline_mode<synchronous>, transform_indices = @transform_5, window_bounds = array<i64: 128, 128>}, {pipeline_mode = #tpu.pipeline_mode<synchronous>, transform_indices = @transform_6, window_bounds = array<i64: 1, 128>}, {transform_indices = @transform_7, window_bounds = array<i64: 48, 128>}]} {
    %c0 = arith.constant 0 : index
    %c0_0 = arith.constant 0 : index
    %0 = vector.load %arg1[%c0, %c0_0] : memref<48x16xbf16, #tpu.memory_space<vmem>>, vector<48x16xbf16>
    %c0_1 = arith.constant 0 : index
    %c0_2 = arith.constant 0 : index
    %1 = vector.load %arg2[%c0_1, %c0_2] : memref<16x128xbf16, #tpu.memory_space<vmem>>, vector<16x128xbf16>
    %c0_3 = arith.constant 0 : index
    %c0_4 = arith.constant 0 : index
    %2 = vector.load %arg3[%c0_3, %c0_4] : memref<1x128xf32, #tpu.memory_space<vmem>>, vector<1x128xf32>
    %cst = arith.constant dense<0.000000e+00> : vector<48x128xf32>
    %3 = tpu.matmul %0, %1, %cst {dimension_numbers = #tpu.dot_dimension_numbers<[1], [0], [0], [1], [0, 0, 1, 1], [], []>} : vector<48x16xbf16>, vector<16x128xbf16>, vector<48x128xf32> -> vector<48x128xf32>
    %4 = vector.broadcast %2 : vector<1x128xf32> to vector<48x128xf32>
    %5 = arith.addf %3, %4 : vector<48x128xf32>
    %cst_5 = arith.constant 0.000000e+00 : f32
    %6 = vector.broadcast %cst_5 : f32 to vector<48x128xf32>
    %7 = arith.maximumf %5, %6 : vector<48x128xf32>
    %8 = arith.truncf %7 : vector<48x128xf32> to vector<48x128xbf16>
    %c0_6 = arith.constant 0 : index
    %c0_7 = arith.constant 0 : index
    %9 = vector.load %arg4[%c0_6, %c0_7] : memref<128x128xbf16, #tpu.memory_space<vmem>>, vector<128x128xbf16>
    %c0_8 = arith.constant 0 : index
    %c0_9 = arith.constant 0 : index
    %10 = vector.load %arg5[%c0_8, %c0_9] : memref<1x128xf32, #tpu.memory_space<vmem>>, vector<1x128xf32>
    %cst_10 = arith.constant dense<0.000000e+00> : vector<48x128xf32>
    %11 = tpu.matmul %8, %9, %cst_10 {dimension_numbers = #tpu.dot_dimension_numbers<[1], [0], [0], [1], [0, 0, 1, 1], [], []>} : vector<48x128xbf16>, vector<128x128xbf16>, vector<48x128xf32> -> vector<48x128xf32>
    %12 = vector.broadcast %10 : vector<1x128xf32> to vector<48x128xf32>
    %13 = arith.addf %11, %12 : vector<48x128xf32>
    %cst_11 = arith.constant 0.000000e+00 : f32
    %14 = vector.broadcast %cst_11 : f32 to vector<48x128xf32>
    %15 = arith.maximumf %13, %14 : vector<48x128xf32>
    %16 = arith.truncf %15 : vector<48x128xf32> to vector<48x128xbf16>
    %c0_12 = arith.constant 0 : index
    %c0_13 = arith.constant 0 : index
    %17 = vector.load %arg6[%c0_12, %c0_13] : memref<128x128xbf16, #tpu.memory_space<vmem>>, vector<128x128xbf16>
    %c0_14 = arith.constant 0 : index
    %c0_15 = arith.constant 0 : index
    %18 = vector.load %arg7[%c0_14, %c0_15] : memref<1x128xf32, #tpu.memory_space<vmem>>, vector<1x128xf32>
    %cst_16 = arith.constant dense<0.000000e+00> : vector<48x128xf32>
    %19 = tpu.matmul %16, %17, %cst_16 {dimension_numbers = #tpu.dot_dimension_numbers<[1], [0], [0], [1], [0, 0, 1, 1], [], []>} : vector<48x128xbf16>, vector<128x128xbf16>, vector<48x128xf32> -> vector<48x128xf32>
    %20 = vector.broadcast %18 : vector<1x128xf32> to vector<48x128xf32>
    %21 = arith.addf %19, %20 : vector<48x128xf32>
    %c0_17 = arith.constant 0 : index
    %c0_18 = arith.constant 0 : index
    %22 = vector.load %arg8[%c0_17, %c0_18] : memref<48x128xf32, #tpu.memory_space<vmem>>, vector<48x128xf32>
    tpu.vector_store %arg8[%c0_17, %c0_18], %21 {strides = array<i32>} : memref<48x128xf32, #tpu.memory_space<vmem>>, vector<48x128xf32>,
    return
  }
  func.func @transform_0(%arg0: i32) -> (i32, i32) {
    %c0_i32 = arith.constant 0 : i32
    %c0_i32_0 = arith.constant 0 : i32
    return %arg0, %c0_i32 : i32, i32
  }
  func.func @transform_1(%arg0: i32) -> (i32, i32) {
    %c0_i32 = arith.constant 0 : i32
    %c0_i32_0 = arith.constant 0 : i32
    %c0_i32_1 = arith.constant 0 : i32
    return %c0_i32, %c0_i32_0 : i32, i32
  }
  func.func @transform_2(%arg0: i32) -> (i32, i32) {
    %c0_i32 = arith.constant 0 : i32
    %c0_i32_0 = arith.constant 0 : i32
    %c0_i32_1 = arith.constant 0 : i32
    return %c0_i32, %c0_i32_0 : i32, i32
  }
  func.func @transform_3(%arg0: i32) -> (i32, i32) {
    %c0_i32 = arith.constant 0 : i32
    %c0_i32_0 = arith.constant 0 : i32
    %c0_i32_1 = arith.constant 0 : i32
    return %c0_i32, %c0_i32_0 : i32, i32
  }
  func.func @transform_4(%arg0: i32) -> (i32, i32) {
    %c0_i32 = arith.constant 0 : i32
    %c0_i32_0 = arith.constant 0 : i32
    %c0_i32_1 = arith.constant 0 : i32
    return %c0_i32, %c0_i32_0 : i32, i32
  }
  func.func @transform_5(%arg0: i32) -> (i32, i32) {
    %c0_i32 = arith.constant 0 : i32
    %c0_i32_0 = arith.constant 0 : i32
    %c0_i32_1 = arith.constant 0 : i32
    return %c0_i32, %c0_i32_0 : i32, i32
  }
  func.func @transform_6(%arg0: i32) -> (i32, i32) {
    %c0_i32 = arith.constant 0 : i32
    %c0_i32_0 = arith.constant 0 : i32
    %c0_i32_1 = arith.constant 0 : i32
    return %c0_i32, %c0_i32_0 : i32, i32
  }
  func.func @transform_7(%arg0: i32) -> (i32, i32) {
    %c0_i32 = arith.constant 0 : i32
    %c0_i32_0 = arith.constant 0 : i32
    return %arg0, %c0_i32 : i32, i32
  }
}

</mosaic_0001>

<bundles_post_ra>
// kernel: tpu_custom_call.1
= control target key start
LH: loop header
LB: loop body
LE: loop exit
PB: predicated region body
PF: predicated region fallthrough
CT: control target
= control target key end

     0   :  { %12 = vsyncpa [#allocation3], 0  ;;  %s1440_s0 = inlined_call_operand.vmem [shape: bf16[96,16], index: 0, kind: input, shape index: {}]   ;;  %s1441_s1 = inlined_call_operand.hbm [shape: bf16[16,128], index: 1, kind: input, shape index: {}]   ;;  %s1442_s2 = inlined_call_operand.vmem [shape: f32[1,128], index: 2, kind: input, shape index: {}]   ;;  %s1443_s3 = inlined_call_operand.vmem [shape: bf16[128,128], index: 3, kind: input, shape index: {}]   ;;  %s1444_s4 = inlined_call_operand.vmem [shape: f32[1,128], index: 4, kind: input, shape index: {}]   ;;  %s1445_s5 = inlined_call_operand.hbm [shape: bf16[128,128], index: 5, kind: input, shape index: {}]   ;;  %s1446_s6 = inlined_call_operand.vmem [shape: f32[1,128], index: 6, kind: input, shape index: {}]   ;;  %s1447_s7 = inlined_call_operand.hbm [shape: f32[96,128], index: 7, kind: output, shape index: {}]  }
   0x1   :  { %13 = vsyncpa [#allocation6], 0 }
   0x2   :  { %14 = vsyncpa [#allocation4], 0 }
   0x3   :  { %16 = vsyncpa [#allocation4 + $0x1], 0  ;;  %s1191_s24 = smov 0   ;;  %s1193_s25 = smov 0  }
   0x4   :  { %s1195_s26 = smov 0   ;;  %s1197_s27 = smov 0  }
   0x5 LB: > { %s1212_s28 = sadd.s32 4294967295, %s1140_s27   ;;  %s792_s29 = sadd.s32 4294967294, %s1140_s27   ;;  %s1140_s27 = sphi %s1197_s27, %s1467_s27   ;;  %s1136_s26 = sphi %s1195_s26, %s1466_s26   ;;  %s1132_s25 = sphi %s1193_s25, %s1465_s25   ;;  %s1128_s24 = sphi %s1191_s24, %s1464_s24  }
   0x6   : > { %s1216_s30 = sadd.s32 1, %s1140_s27   ;;  %s181_s8 = sadd.s32 1, %s1136_s26 }
   0x7   : > { %s178_s9 = ssub.s32 %s1140_s27, %s1216_s30  ;;  %p191_p0 = scmp.ne.s32.totalorder %s1136_s26, %s1132_s25 }
   0x8   : > { %p179_p1 = scmp.eq.s32.totalorder %s178_s9, 0  ;;  %p192_p2 = scmp.eq.s32.totalorder %s1212_s28, 1 }
   0x9   : > { %p197_p3 = scmp.ne.s32.totalorder %s1132_s25, %s1128_s24  ;;  %p198_p4 = scmp.eq.s32.totalorder %s792_s29, 1 }
   0xa   : > { %s1227_s10 = scalar_select %p179_p1, %s1136_s26, %s181_s8  }
   0xb   : > { %p1229_p5 = por %p192_p2, %p191_p0  ;;  %p1233_p6 = por %p198_p4, %p197_p3 }
   0xc   : > { %1451 = sst [smem:[#allocation11_spill]] %s1227_s10  ;;  %p793_p7 = scmp.ge.s32.totalorder %s1140_s27, 1 }
   0xd   : > { %s1452_s11 = scalar_select %p1229_p5, 1, 0 }
   0xe   : > { %s1453_s12 = scalar_select %p1233_p6, 1, 0 }
   0xf   : > { %p205_p8 = scmp.lt.s32.totalorder %s1140_s27, 3  ;;  %p1448_p9 = scmp.eq.s32.totalorder %s1212_s28, 0 }
  0x10   : > { %s1142_s14 = smov [#allocation2]   ;;  %s1143_s17 = smov [#allocation5]  }
  0x11   : > { %p1240_p10 = pnand %p793_p7, %p205_p8  ;;  %s217_s15 = sshll.u32 %s1142_s14, 4  ;;  %s218_s15 = int_to_ptr.vmem [resolvable:$true] %s217_s15 }
  0x12   : > { %s239_s18 = sshll.u32 %s1143_s17, 4  ;;  %s1014_s21 = scalar_lea.hbm %s1441_s1, 128  ;;  %s1252_s18 = int_to_ptr.vmem [resolvable:$true] %s239_s18 }
  0x13   : > { %s1454_s13 = scalar_select %p1240_p10, 1, 0 }
  0x14   : > { %p938_p11 = pneg %p1240_p10  ;;  %p1015_p13 = scmp.ne.s32.totalorder %s1441_s1, %s1014_s21 }
  0x15   : > { %p1021_p3 = scmp.lt.u32.totalorder %s1014_s21, %s1441_s1 }
  0x16   : > { %p1248_p12 = pnand %p1448_p9, %p938_p11 }
  0x18   : > { %p1016_p0 = pneg %p1248_p12 }
  0x1a   : > { %p1017_p1 = pnand %p1016_p0, %p1015_p13 }
  0x1c   : > { %p1018_p2 = pneg %p1017_p1 }
  0x1e   : > { %p1023_p4 = pnand %p1021_p3, %p1018_p2 }
  0x20   : > { %1026 = shalt.err (!%p1023_p4)
}
  0x21   : > { %s1027_s9 = scalar_lea.vmem %s218_s15, 128  ;;  %p1035_p9 = scmp.lt.s32.totalorder %s218_s15, %s218_s15 }
  0x22   : > { %p1028_p7 = scmp.ne.s32.totalorder %s218_s15, %s1027_s9  ;;  %p1036_p6 = scmp.lt.s32.totalorder %s1027_s9, %s1027_s9 }
  0x24   : > { %p1030_p8 = pnand %p1028_p7, %p1016_p0  ;;  %p1037_p5 = por %p1036_p6, %p1035_p9 }
  0x26   : > { %p1031_p11 = pneg %p1030_p8 }
  0x28   : > { %p1038_p10 = pnand %p1037_p5, %p1031_p11 }
  0x2a   : > { %1041 = shalt.err (!%p1038_p10)
}
  0x2b   : > { %s1144_s14 = smov 64   ;;  %s1145_s17 = smov 4  }
  0x2c   : > { %941 = dma.hbm_to_vmem [thread:$0]  (!%p1248_p12), %s1441_s1, 128, %s218_s15, [#allocation3], %s1144_s14, %s1144_s14, %s1145_s17  }
  0x2d   : > { %s1042_s23 = scalar_lea.hbm %s1445_s5, 1024 }
  0x2e   : > { %p1043_p13 = scmp.ne.s32.totalorder %s1445_s5, %s1042_s23  ;;  %p1049_p9 = scmp.lt.u32.totalorder %s1042_s23, %s1445_s5 }
  0x30   : > { %p1045_p5 = pnand %p1043_p13, %p1016_p0 }
  0x32   : > { %p1046_p6 = pneg %p1045_p5 }
  0x34   : > { %p1051_p10 = pnand %p1049_p9, %p1046_p6 }
  0x36   : > { %1054 = shalt.err (!%p1051_p10)
}
  0x37   : > { %s1055_s15 = scalar_lea.vmem %s1252_s18, 1024  ;;  %p1063_p4 = scmp.lt.s32.totalorder %s1252_s18, %s1252_s18 }
  0x38   : > { %p1056_p1 = scmp.ne.s32.totalorder %s1252_s18, %s1055_s15  ;;  %p1064_p7 = scmp.lt.s32.totalorder %s1055_s15, %s1055_s15 }
  0x3a   : > { %p1058_p2 = pnand %p1056_p1, %p1016_p0  ;;  %p1065_p8 = por %p1064_p7, %p1063_p4 }
  0x3c   : > { %p1059_p3 = pneg %p1058_p2 }
  0x3e   : > { %p1066_p11 = pnand %p1065_p8, %p1059_p3 }
  0x40   : > { %1069 = shalt.err (!%p1066_p11)
}
  0x41   : > { %944 = dma.hbm_to_vmem [thread:$0]  (!%p1248_p12), %s1445_s5, 1024, %s1252_s18, [#allocation6], %s1144_s14, %s1144_s14, %s1145_s17  }
  0x42   : > { %p1456_p13 = scmp.ne.s32.totalorder %s1454_s13, 0 }
  0x43   : > { %p1457_p5 = scmp.eq.s32.totalorder (!%p1456_p13), %s1212_s28, 0 }
  0x44   : > { %267 = sbr.rel (%p1456_p13) target bundleno = 775 (0x307), region = 48 }
  0x4b   : > { %1115 = dma.done.wait (%p1457_p5), [#allocation3], 128   ;;  %p1458_p0 = pmov %p1457_p5 }
  0x4d   : > { %1117 = vsyncadd (%p1458_p0), [#allocation3], 4294967168  ;;  %p1459_p6 = pmov %p1458_p0 }
  0x4e   : > { %p1460_p9 = pmov %p1458_p0 }
  0x4f   : > { %1119 = dma.done.wait (%p1459_p6), [#allocation6], 1024  }
  0x50   : > { %1121 = vsyncadd (%p1460_p9), [#allocation6], 4294966272  ;;  %s303_s16 = smul.u32 6, %s1212_s28  ;;  %v1146_v0 = vmov 0.0   ;;  %vm1147_vm0 = vmmov 0   ;;  %v994_v1 = vld [vmem:[#allocation2] sm:$0xff]  }
  0x51   : > { %857 = vmatprep.subr.bf16.mxu0 %v1146_v0  ;;  %859 = vmatprep.mubr.msk.bf16.mxu0 %vm1147_vm0, %v1146_v0  ;;  %vm347_vm1 = vcmask 130048   ;;  %v998_v3 = vld [vmem:[%s1443_s3] sm:$0xff]   ;;  %v999_v4 = vld [vmem:[%s1443_s3 + $0x8] sm:$0xff]   ;;  %v1000_v6 = vld [vmem:[%s1443_s3 + $0x10] sm:$0xff]   ;;  %s300_s8 = sand.u32 1, %s1132_s25   ;;  %p1461_p1 = scmp.ne.s32.totalorder %s1452_s11, 0 }
  0x52   : > { %p304_p12 = scmp.lt.s32.totalorder %s303_s16, 11  ;;  %871 = vmatprep.subr.bf16.mxu1 %v1146_v0  ;;  %887 = vmatprep.mubr.msk.bf16.mxu1 %vm1147_vm0, %v1146_v0  ;;  %v1001_v7 = vld [vmem:[%s1443_s3 + $0x18] sm:$0xff]   ;;  %v1002_v9 = vld [vmem:[%s1443_s3 + $0x20] sm:$0xff]   ;;  %v1003_v10 = vld [vmem:[%s1443_s3 + $0x28] sm:$0xff]   ;;  %s927_s9 = smul.u32 48, %s300_s8 }
  0x53   : > { %858 = vmatpush3.bf16.msra.mxu0 %v994_v1  ;;  %872 = vmatpush3.bf16.msra.mxu1 %v998_v3  ;;  %v1004_v11 = vld [vmem:[%s1443_s3 + $0x30] sm:$0xff]   ;;  %v1005_v12 = vld [vmem:[%s1443_s3 + $0x38] sm:$0xff]   ;;  %v1006_v13 = vld [vmem:[#allocation5] sm:$0xff]   ;;  %s1148_s21 = smov [#allocation7]  }
  0x54   : > { %s1469_s16 = smov (!%p304_p12, %s303_s16), 11  ;;  %899 = vmatprep.subr.bf16.mxu0 %v1146_v0  ;;  %873 = vmatprep.subr.bf16.mxu1 %v1146_v0  ;;  %v1007_v14 = vld [vmem:[#allocation5 + $0x8] sm:$0xff]   ;;  %v1008_v15 = vld [vmem:[#allocation5 + $0x10] sm:$0xff]   ;;  %v1009_v16 = vld [vmem:[#allocation5 + $0x18] sm:$0xff]   ;;  %s302_s19 = scalar_lea.vmem [#allocation7], %s927_s9 }
  0x55   : > { %s800_s13 = sshll.u32 %s1469_s16, 2  ;;  %v1010_v17 = vld [vmem:[#allocation5 + $0x20] sm:$0xff]   ;;  %v1011_v18 = vld [vmem:[#allocation5 + $0x28] sm:$0xff]   ;;  %v801_v19 = vld [vmem:[%s1442_s2] ss:$0 sm:$0xff]  ;;  %s830_s16 = smul.u32 768, %s1212_s28 }
  0x56   : > { %s307_s17 = scalar_lea.vmem %s1440_s0, %s800_s13  ;;  %v1012_v47 = vld [vmem:[#allocation5 + $0x30] sm:$0xff]   ;;  %v1013_v48 = vld [vmem:[#allocation5 + $0x38] sm:$0xff]   ;;  %s708_s13 = sshll.u32 %s302_s19, 4  ;;  %s1390_s13 = int_to_ptr.vmem [resolvable:$true] %s708_s13 }
  0x57   : > { %v995_v2 = vld [vmem:[%s307_s17] sm:$0xff]   ;;  %v996_v5 = vld [vmem:[%s307_s17 + $0x8] sm:$0xff]   ;;  %874 = vmatpush3.bf16.msra.mxu1 %v999_v4  ;;  %v997_v8 = vld [vmem:[%s307_s17 + $0x10] sm:$0xff]   ;;  %s1395_s17 = scalar_lea.hbm %s1447_s7, %s830_s16  ;;  %s1399_s28 = scalar_lea.sflag [#allocation4], %s300_s8 }
  0x58   : > { %860 = vmatmul.mubr.msk.bf16.vlgmr.msra.gmra.mrb[0].mxu0 %vm347_vm1, %v995_v2  ;;  %875 = vmatprep.subr.bf16.mxu1 %v1146_v0  ;;  %v809_v49 = vld [vmem:[%s1444_s4] ss:$0 sm:$0xff]  ;;  %s1070_s20 = scalar_lea.vmem %s1390_s13, 768  ;;  %s1074_s22 = sshll.u32 %s1148_s21, 4  ;;  %s1075_s22 = int_to_ptr.vmem [resolvable:$false] %s1074_s22 }
  0x59   : > { %863 = vmatprep.mubr.msk.bf16.mxu0 %vm1147_vm0, %v1146_v0  ;;  %900 = vmatpush3.bf16.msra.mxu0 %v1006_v13  ;;  %p1071_p10 = scmp.ne.s32.totalorder %s1390_s13, %s1070_s20  ;;  %s1076_s23 = scalar_lea.vmem %s1075_s22, 1536 }
  0x5a   : > { %901 = vmatprep.subr.bf16.mxu0 %v1146_v0  ;;  %p1077_p4 = scmp.lt.s32.totalorder %s1390_s13, %s1075_s22  ;;  %p1078_p7 = scmp.lt.s32.totalorder %s1076_s23, %s1070_s20 }
  0x5b   : > { %876 = vmatpush3.bf16.msra.mxu1 %v1000_v6  ;;  %p1072_p2 = pnand %p1071_p10, %p1461_p1 }
  0x5c   : > { %877 = vmatprep.subr.bf16.mxu1 %v1146_v0  ;;  %p1079_p8 = por %p1078_p7, %p1077_p4 }
  0x5d   : > { %902 = vmatpush3.bf16.msra.mxu0 %v1007_v14  ;;  %v818_v14 = vld [vmem:[%s1446_s6] ss:$0 sm:$0xff]  ;;  %p1073_p3 = pneg %p1072_p2 }
  0x5e   : > { %903 = vmatprep.subr.bf16.mxu0 %v1146_v0 }
  0x5f   : > { %878 = vmatpush3.bf16.msra.mxu1 %v1001_v7  ;;  %p1080_p11 = pnand %p1079_p8, %p1073_p3 }
  0x60   : > { %864 = vmatmul.mubr.msk.bf16.gmra.mrb[4].mxu0 %vm347_vm1, %v996_v5  ;;  %879 = vmatprep.subr.bf16.mxu1 %v1146_v0 }
  0x61   : > { %867 = vmatprep.mubr.msk.bf16.mxu0 %vm1147_vm0, %v1146_v0  ;;  %904 = vmatpush3.bf16.msra.mxu0 %v1008_v15 }
  0x62   : > { %905 = vmatprep.subr.bf16.mxu0 %v1146_v0 }
  0x63   : > { %880 = vmatpush3.bf16.msra.mxu1 %v1002_v9 }
  0x64   : > { %881 = vmatprep.subr.bf16.mxu1 %v1146_v0 }
  0x65   : > { %906 = vmatpush3.bf16.msra.mxu0 %v1009_v16 }
  0x66   : > { %907 = vmatprep.subr.bf16.mxu0 %v1146_v0 }
  0x67   : > { %882 = vmatpush3.bf16.msra.mxu1 %v1003_v10 }
  0x68   : > { %868 = vmatmul.mubr.msk.bf16.gmra.mrb[8].mxu0 %vm347_vm1, %v997_v8  ;;  %883 = vmatprep.subr.bf16.mxu1 %v1146_v0 }
  0x69   : > { %915 = vmatprep.mubr.msk.bf16.mxu0 %vm1147_vm0, %v1146_v0  ;;  %908 = vmatpush3.bf16.msra.mxu0 %v1010_v17 }
  0x6a   : > { %909 = vmatprep.subr.bf16.mxu0 %v1146_v0 }
  0x6b   : > { %884 = vmatpush3.bf16.msra.mxu1 %v1004_v11 }
  0x6c   : > { %885 = vmatprep.subr.bf16.mxu1 %v1146_v0 }
  0x6d   : > { %910 = vmatpush3.bf16.msra.mxu0 %v1011_v18 }
  0x6e   : > { %911 = vmatprep.subr.bf16.mxu0 %v1146_v0 }
  0x6f   : > { %886 = vmatpush3.bf16.msra.mxu1 %v1005_v12 }
  0x71   : > { %912 = vmatpush3.bf16.msra.mxu0 %v1012_v47 }
  0x72   : > { %913 = vmatprep.subr.bf16.mxu0 %v1146_v0 }
  0x75   : > { %914 = vmatpush3.bf16.msra.mxu0 %v1013_v48 }
 0x12b   : > { %v391_v20 = vpop.f32.mrb[0].mxu0 }
 0x12c   : > { %v392_v21 = vadd.f32 %v801_v19, %v391_v20  ;;  %v861_v22 = vpop.f32.mrb[1].mxu0 }
 0x12d   : > { %v394_v23 = vpop.f32.mrb[2].mxu0 }
 0x12e   : > { %v395_v24 = vadd.f32 %v801_v19, %v394_v23  ;;  %v862_v25 = vpop.f32.mrb[3].mxu0  ;;  %v414_v26 = vmax.f32 %v392_v21, 0.0 }
 0x130   : > { %v415_v27 = vmax.f32 %v395_v24, 0.0 }
 0x132   : > { %v420_v28 = vpack.c.bf16 %v415_v27, %v414_v26 }
 0x133   : > { %v399_v29 = vpop.f32.mrb[4].mxu0 }
 0x134   : > { %v400_v30 = vadd.f32 %v801_v19, %v399_v29  ;;  %v865_v31 = vpop.f32.mrb[5].mxu0  ;;  %888 = vmatmul.mubr.bf16.vlgmr.msra.gmra.mrb[0].mxu1 %v420_v28 }
 0x135   : > { %v402_v32 = vpop.f32.mrb[6].mxu0  ;;  %891 = vmatprep.mubr.msk.bf16.mxu1 %vm1147_vm0, %v1146_v0 }
 0x136   : > { %v403_v33 = vadd.f32 %v801_v19, %v402_v32  ;;  %v866_v34 = vpop.f32.mrb[7].mxu0  ;;  %v416_v35 = vmax.f32 %v400_v30, 0.0 }
 0x138   : > { %v417_v36 = vmax.f32 %v403_v33, 0.0 }
 0x13a   : > { %v421_v37 = vpack.c.bf16 %v417_v36, %v416_v35 }
 0x13b   : > { %v407_v38 = vpop.f32.mrb[8].mxu0 }
 0x13c   : > { %v408_v39 = vadd.f32 %v801_v19, %v407_v38  ;;  %v869_v40 = vpop.f32.mrb[9].mxu0  ;;  %892 = vmatmul.mubr.bf16.gmra.mrb[4].mxu1 %v421_v37 }
 0x13d   : > { %v410_v41 = vpop.f32.mrb[10].mxu0  ;;  %895 = vmatprep.mubr.msk.bf16.mxu1 %vm1147_vm0, %v1146_v0 }
 0x13e   : > { %v411_v42 = vadd.f32 %v801_v19, %v410_v41  ;;  %v870_v43 = vpop.f32.mrb[11].mxu0  ;;  %v418_v44 = vmax.f32 %v408_v39, 0.0 }
 0x140   : > { %v419_v45 = vmax.f32 %v411_v42, 0.0 }
 0x142   : > { %v422_v46 = vpack.c.bf16 %v419_v45, %v418_v44 }
 0x144   : > { %896 = vmatmul.mubr.bf16.gmra.mrb[8].mxu1 %v422_v46 }
 0x207   : > { %v528_v50 = vpop.f32.mrb[0].mxu1 }
 0x208   : > { %v529_v51 = vadd.f32 %v809_v49, %v528_v50  ;;  %v889_v52 = vpop.f32.mrb[1].mxu1 }
 0x209   : > { %v531_v53 = vpop.f32.mrb[2].mxu1 }
 0x20a   : > { %v532_v54 = vadd.f32 %v809_v49, %v531_v53  ;;  %v890_v55 = vpop.f32.mrb[3].mxu1  ;;  %v551_v56 = vmax.f32 %v529_v51, 0.0 }
 0x20c   : > { %v552_v57 = vmax.f32 %v532_v54, 0.0 }
 0x20e   : > { %v557_v58 = vpack.c.bf16 %v552_v57, %v551_v56 }
 0x20f   : > { %v536_v59 = vpop.f32.mrb[4].mxu1 }
 0x210   : > { %v537_v60 = vadd.f32 %v809_v49, %v536_v59  ;;  %v893_v61 = vpop.f32.mrb[5].mxu1  ;;  %916 = vmatmul.mubr.bf16.vlgmr.msra.gmra.mrb[12].mxu0 %v557_v58 }
 0x211   : > { %v539_v62 = vpop.f32.mrb[6].mxu1  ;;  %919 = vmatprep.mubr.msk.bf16.mxu0 %vm1147_vm0, %v1146_v0 }
 0x212   : > { %v540_v63 = vadd.f32 %v809_v49, %v539_v62  ;;  %v894_v1 = vpop.f32.mrb[7].mxu1  ;;  %v553_v2 = vmax.f32 %v537_v60, 0.0 }
 0x214   : > { %v554_v3 = vmax.f32 %v540_v63, 0.0 }
 0x216   : > { %v558_v4 = vpack.c.bf16 %v554_v3, %v553_v2 }
 0x217   : > { %v544_v5 = vpop.f32.mrb[8].mxu1 }
 0x218   : > { %v545_v6 = vadd.f32 %v809_v49, %v544_v5  ;;  %v897_v7 = vpop.f32.mrb[9].mxu1  ;;  %920 = vmatmul.mubr.bf16.gmra.mrb[16].mxu0 %v558_v4 }
 0x219   : > { %v547_v8 = vpop.f32.mrb[10].mxu1  ;;  %923 = vmatprep.mubr.msk.bf16.mxu0 %vm1147_vm0, %v1146_v0 }
 0x21a   : > { %v548_v9 = vadd.f32 %v809_v49, %v547_v8  ;;  %v898_v10 = vpop.f32.mrb[11].mxu1  ;;  %v555_v11 = vmax.f32 %v545_v6, 0.0 }
 0x21c   : > { %v556_v12 = vmax.f32 %v548_v9, 0.0 }
 0x21e   : > { %v559_v13 = vpack.c.bf16 %v556_v12, %v555_v11 }
 0x220   : > { %924 = vmatmul.mubr.bf16.gmra.mrb[20].mxu0 %v559_v13 }
 0x2e3   : > { %v665_v15 = vpop.f32.mrb[12].mxu0 }
 0x2e4   : > { %v666_v16 = vadd.f32 %v818_v14, %v665_v15  ;;  %v917_v17 = vpop.f32.mrb[13].mxu0 }
 0x2e5   : > { %v668_v18 = vpop.f32.mrb[14].mxu0 }
 0x2e6   : > { %688 = vst [vmem:[%s302_s19] sm:$0xff] %v666_v16  ;;  %v669_v0 = vadd.f32 %v818_v14, %v668_v18  ;;  %v918_v19 = vpop.f32.mrb[15].mxu0 }
 0x2e8   : > { %689 = vst [vmem:[%s302_s19 + $0x8] sm:$0xff] %v669_v0 }
 0x2eb   : > { %v673_v20 = vpop.f32.mrb[16].mxu0 }
 0x2ec   : > { %v674_v21 = vadd.f32 %v818_v14, %v673_v20  ;;  %v921_v22 = vpop.f32.mrb[17].mxu0 }
 0x2ed   : > { %v676_v23 = vpop.f32.mrb[18].mxu0 }
 0x2ee   : > { %690 = vst [vmem:[%s302_s19 + $0x10] sm:$0xff] %v674_v21  ;;  %v677_v24 = vadd.f32 %v818_v14, %v676_v23  ;;  %v922_v25 = vpop.f32.mrb[19].mxu0 }
 0x2f0   : > { %691 = vst [vmem:[%s302_s19 + $0x18] sm:$0xff] %v677_v24 }
 0x2f3   : > { %v681_v26 = vpop.f32.mrb[20].mxu0 }
 0x2f4   : > { %v682_v27 = vadd.f32 %v818_v14, %v681_v26  ;;  %v925_v28 = vpop.f32.mrb[21].mxu0 }
 0x2f5   : > { %v684_v29 = vpop.f32.mrb[22].mxu0 }
 0x2f6   : > { %692 = vst [vmem:[%s302_s19 + $0x20] sm:$0xff] %v682_v27  ;;  %v685_v30 = vadd.f32 %v818_v14, %v684_v29  ;;  %v926_v31 = vpop.f32.mrb[23].mxu0 }
 0x2f8   : > { %693 = vst [vmem:[%s302_s19 + $0x28] sm:$0xff] %v685_v30 }
 0x2f9   : > { %1083 = shalt.err (!%p1080_p11)
}
 0x2fa   : > { %s1084_s29 = scalar_lea.hbm %s1395_s17, 768  ;;  %s1088_s15 = scalar_lea.hbm %s1447_s7, 1536 }
 0x2fb   : > { %p1085_p13 = scmp.ne.s32.totalorder %s1395_s17, %s1084_s29  ;;  %p1089_p6 = scmp.lt.u32.totalorder %s1395_s17, %s1447_s7 }
 0x2fc   : > { %p1090_p9 = scmp.lt.u32.totalorder %s1088_s15, %s1084_s29  ;;  %p1092_p10 = scmp.lt.u32.totalorder %s1084_s29, %s1395_s17 }
 0x2fd   : > { %p1086_p5 = pnand %p1085_p13, %p1461_p1 }
 0x2fe   : > { %p1091_p12 = por %p1090_p9, %p1089_p6 }
 0x2ff   : > { %p1087_p0 = pneg %p1086_p5 }
 0x300   : > { %p1093_p2 = por %p1092_p10, %p1091_p12 }
 0x302   : > { %p1094_p3 = pnand %p1093_p2, %p1087_p0 }
 0x304   : > { %1097 = shalt.err (!%p1094_p3)
}
 0x305   : > { %s1149_s16 = smov 128   ;;  %s1150_s18 = smov 8  }
 0x306   : > { %936 = dma.vmem_to_hbm [thread:$0]  (%p1461_p1), %s1390_s13, 768, %s1395_s17, %s1399_s28, %s1149_s16, %s1149_s16, %s1150_s18  }
 0x307 PF: > { %p953_p4 = scmp.ge.s32.totalorder %s1140_s27, 2  ;;  %s723_s14 = sand.u32 1, %s1128_s24  }
 0x308   : > { %p1462_p7 = scmp.ne.s32.totalorder %s1453_s12, 0  ;;  %s724_s20 = scalar_lea.sflag [#allocation4], %s723_s14 }
 0x30a   : > { %p946_p8 = pnand %p953_p4, %p1462_p7 }
 0x30c   : > { %1123 = dma.done.wait (!%p946_p8), %s724_s20, 768  }
 0x30d   : > { %1125 = vsyncadd (!%p946_p8), %s724_s20, 4294966528  ;;  %s1463_s21 = sld [smem:[#allocation11_spill]]  ;;  %p19_p11 = scmp.ge.s32.totalorder %s1216_s30, 4  }
 0x30e   : > { %s1464_s24 = smov %s1132_s25  ;;  %s1465_s25 = smov %s1136_s26 }
 0x30f   : > { %s1467_s27 = smov %s1216_s30  ;;  %21 = sbr.rel (!%p19_p11) target bundleno = 5 (0x5), region = 92 }
 0x313   : > { %s1466_s26 = smov %s1463_s21 }
 0x316   :  { %729 = vsyncpa [#allocation3], 1 }
 0x317   :  { %731 = vsyncpa [#allocation3 + $0x1], 1 }
 0x318   :  { %732 = vsyncpa [#allocation6], 1 }
 0x319   :  { %733 = vsyncpa [#allocation4], 1 }
 0x31a   :  { %735 = vsyncpa [#allocation4 + $0x1], 1 }

</bundles_post_ra>
